<compile_context>
chip_gen: v7x
topology: tpu7x:2x2x1
jax: 0.10.0
libtpu: 0.0.40
codegen_flags: <defaults>
</compile_context>

<pallas_src>
import jax
import jax.numpy as jnp
from jax.experimental import pallas as pl
from jax.experimental.pallas import tpu as pltpu
import numpy as np


def _round_up(x, m):
    return (x + m - 1) // m * m


def rnn_kernel(x_ref, len_ref, wih_ref, whh_ref, b_ref, wout_ref, bout_ref,
               out_ref, h_scratch):
    """One (batch-block, time-block) grid step of the ReLU RNN.

    x_ref:    (T_blk, B_blk, E_pad) bf16   streamed time-major input block
    len_ref:  (B_blk, 1) int32             per-row valid lengths
    wih_ref:  (E_pad, H_pad) bf16, whh_ref: (H_pad, H_pad) bf16
    b_ref:    (1, H_pad) f32 (= b_ih + b_hh), wout/bout: linear head
    h_scratch:(B_blk, H_pad) f32           hidden state carried across time blocks
    """
    ti = pl.program_id(1)
    nt = pl.num_programs(1)
    t_blk, b_blk, e_pad = x_ref.shape
    h_pad = whh_ref.shape[0]

    @pl.when(ti == 0)
    def _():
        h_scratch[...] = jnp.zeros_like(h_scratch)

    # --- Input projection for the whole time block: one MXU matmul, off the
    # serial path. (Reshape done in f32 so the leading-dim merge is a layout
    # no-op; the matmul itself runs in bf16.)
    x2 = (x_ref[...].astype(jnp.float32)
          .reshape(t_blk * b_blk, e_pad)
          .astype(jnp.bfloat16))
    xp = (jnp.dot(x2, wih_ref[...], preferred_element_type=jnp.float32)
          + b_ref[...])                                  # (t_blk*b_blk, H) f32

    # --- Loop-invariant reads hoisted out of the recurrence.
    lens = len_ref[...]                                  # (B_blk, 1) int32
    whh = whh_ref[...]                                   # (H, H) bf16
    t0 = ti * t_blk                                      # global start step

    # --- Serial recurrence over this time block (statically unrolled).
    h = h_scratch[...]                                   # (B_blk, H) f32
    for i in range(t_blk):
        xp_i = xp[i * b_blk:(i + 1) * b_blk]             # static sublane slice
        pre = xp_i + jnp.dot(h.astype(jnp.bfloat16), whh,
                             preferred_element_type=jnp.float32)
        h_new = jnp.maximum(pre, 0.0)                    # nonlinearity='relu'
        valid = (t0 + i) < lens                          # pack_padded semantics
        h = jnp.where(valid, h_new, h)
    h_scratch[...] = h

    # --- Final linear head (dropout is identity at inference).
    @pl.when(ti == nt - 1)
    def _():
        out_ref[...] = (jnp.dot(h.astype(jnp.bfloat16), wout_ref[...],
                                preferred_element_type=jnp.float32)
                        + bout_ref[...])


def rnn_forward(ids, lengths, params, *, t_blk=4, b_blk=8):
    """ids: (B, T) int32, lengths: (B,) int32 -> prediction (B, output_dim)."""
    w_ih, w_hh = params["w_ih"], params["w_hh"]
    b, w_out, b_out = params["b"], params["w_out"], params["b_out"]
    B, T = ids.shape
    E, H = w_ih.shape
    O = w_out.shape[1]

    # Pad to hardware tiles: batch -> sublane multiple, features -> lane multiple.
    Bp = _round_up(B, b_blk)
    Tp = _round_up(T, t_blk)
    Ep = _round_up(E, 128)
    Hp = _round_up(H, 128)
    Op = _round_up(O, 128)

    # Embedding gather (padding_idx row is zero in the table) + time-major layout.
    x = params["embedding"][ids]                              # (B, T, E) f32
    x = jnp.transpose(x, (1, 0, 2))                           # (T, B, E)
    x = jnp.pad(x, ((0, Tp - T), (0, Bp - B), (0, Ep - E))).astype(jnp.bfloat16)
    len2d = jnp.pad(lengths.astype(jnp.int32), (0, Bp - B)).reshape(Bp, 1)

    # Zero-padded weights: padded lanes/rows stay exactly zero through relu.
    w_ih_p = jnp.pad(w_ih, ((0, Ep - E), (0, Hp - H))).astype(jnp.bfloat16)
    w_hh_p = jnp.pad(w_hh, ((0, Hp - H), (0, Hp - H))).astype(jnp.bfloat16)
    b_p = jnp.pad(b, ((0, 0), (0, Hp - H)))
    w_out_p = jnp.pad(w_out, ((0, Hp - H), (0, Op - O))).astype(jnp.bfloat16)
    b_out_p = jnp.pad(b_out, ((0, 0), (0, Op - O)))

    grid = (Bp // b_blk, Tp // t_blk)                         # (batch, time)

    out = pl.pallas_call(
        rnn_kernel,
        out_shape=jax.ShapeDtypeStruct((Bp, Op), jnp.float32),
        grid_spec=pltpu.PrefetchScalarGridSpec(
            num_scalar_prefetch=0,
            grid=grid,
            in_specs=[
                # streamed time-major input block
                pl.BlockSpec((t_blk, b_blk, Ep), lambda bi, ti: (ti, bi, 0)),
                # per-batch-block lengths
                pl.BlockSpec((b_blk, 1), lambda bi, ti: (bi, 0)),
                # resident weights / biases
                pl.BlockSpec((Ep, Hp), lambda bi, ti: (0, 0)),
                pl.BlockSpec((Hp, Hp), lambda bi, ti: (0, 0)),
                pl.BlockSpec((1, Hp), lambda bi, ti: (0, 0)),
                pl.BlockSpec((Hp, Op), lambda bi, ti: (0, 0)),
                pl.BlockSpec((1, Op), lambda bi, ti: (0, 0)),
            ],
            out_specs=pl.BlockSpec((b_blk, Op), lambda bi, ti: (bi, 0)),
            scratch_shapes=[pltpu.VMEM((b_blk, Hp), jnp.float32)],
        ),
        compiler_params=pltpu.CompilerParams(
            dimension_semantics=("parallel", "arbitrary"),
            vmem_limit_bytes=32 * 1024 * 1024,
        ),
    )(x, len2d, w_ih_p, w_hh_p, b_p, w_out_p, b_out_p)

    return out[:B, :O]


def init_params(key, vocab_size, embedding_dim, hidden_dim, output_dim, pad_index):
    ks = jax.random.split(key, 7)
    scale = 1.0 / jnp.sqrt(hidden_dim)
    emb = jax.random.normal(ks[0], (vocab_size, embedding_dim), jnp.float32)
    emb = emb.at[pad_index].set(0.0)                          # padding_idx row = 0
    # PyTorch stores W_ih (H, E), W_hh (H, H), linear W (O, H); we keep transposes.
    w_ih = jax.random.uniform(ks[1], (embedding_dim, hidden_dim), jnp.float32,
                              -scale, scale)
    w_hh = jax.random.uniform(ks[2], (hidden_dim, hidden_dim), jnp.float32,
                              -scale, scale)
    b_ih = jax.random.uniform(ks[3], (hidden_dim,), jnp.float32, -scale, scale)
    b_hh = jax.random.uniform(ks[4], (hidden_dim,), jnp.float32, -scale, scale)
    w_out = jax.random.uniform(ks[5], (hidden_dim, output_dim), jnp.float32,
                               -scale, scale)
    b_out = jax.random.uniform(ks[6], (output_dim,), jnp.float32, -scale, scale)
    return dict(
        embedding=emb,
        w_ih=w_ih,
        w_hh=w_hh,
        b=(b_ih + b_hh).reshape(1, hidden_dim),
        w_out=w_out,
        b_out=b_out.reshape(1, output_dim),
    )


def rnn_forward_ref(ids, lengths, params):
    """Pure-JAX f32 reference mirroring pack_padded_sequence + nn.RNN(relu)."""
    emb = params["embedding"][ids]                            # (B, T, E)
    B, T, _ = emb.shape
    H = params["w_hh"].shape[0]
    h = jnp.zeros((B, H), jnp.float32)
    for t in range(T):
        pre = emb[:, t, :] @ params["w_ih"] + h @ params["w_hh"] + params["b"]
        h_new = jnp.maximum(pre, 0.0)
        mask = (t < lengths).reshape(B, 1)
        h = jnp.where(mask, h_new, h)
    return h @ params["w_out"] + params["b_out"]


if __name__ == "__main__":
    vocab_size, embedding_dim, hidden_dim, output_dim = 50, 16, 32, 2
    dropout_rate, pad_index = 0.5, 0       # dropout is identity at inference
    B, T = 2, 8

    key = jax.random.PRNGKey(0)
    k_par, k_ids = jax.random.split(key)
    params = init_params(k_par, vocab_size, embedding_dim, hidden_dim,
                         output_dim, pad_index)

    lengths = jnp.array([8, 5], dtype=jnp.int32)
    ids = jax.random.randint(k_ids, (B, T), 1, vocab_size, dtype=jnp.int32)
    # Pad positions beyond each sequence's length with pad_index.
    pos = jnp.arange(T)[None, :]
    ids = jnp.where(pos < lengths[:, None], ids, pad_index)

    out = jax.block_until_ready(rnn_forward(ids, lengths, params,
                                            t_blk=4, b_blk=8))
    ref = rnn_forward_ref(ids, lengths, params)
    # bf16 streamed activations / weights (f32 accumulation) -> loosened tol.
    np.testing.assert_allclose(np.asarray(out), np.asarray(ref),
                               rtol=3e-2, atol=3e-2)
    print("KERNEL_OK")
</pallas_src>

<mosaic_0001>
module attributes {stable_mosaic.version = 11 : i64} {
  func.func @rnn_kernel(%arg0: i32, %arg1: i32, %arg2: memref<4x8x128xbf16, #tpu.memory_space<vmem>>, %arg3: memref<8x1xi32, #tpu.memory_space<vmem>>, %arg4: memref<128x128xbf16, #tpu.memory_space<vmem>>, %arg5: memref<128x128xbf16, #tpu.memory_space<vmem>>, %arg6: memref<1x128xf32, #tpu.memory_space<vmem>>, %arg7: memref<128x128xbf16, #tpu.memory_space<vmem>>, %arg8: memref<1x128xf32, #tpu.memory_space<vmem>>, %arg9: memref<8x128xf32, #tpu.memory_space<vmem>>, %arg10: memref<8x128xf32, #tpu.memory_space<vmem>>) attributes {dimension_semantics = [#tpu.dimension_semantics<parallel>, #tpu.dimension_semantics<arbitrary>], iteration_bounds = array<i64: 1, 2>, scalar_prefetch = 0 : i64, scratch_operands = 1 : i64, tpu.core_type = #tpu.core_type<tc>, window_params = [{transform_indices = @transform_0, window_bounds = array<i64: 4, 8, 128>}, {transform_indices = @transform_1, window_bounds = array<i64: 8, 1>}, {pipeline_mode = #tpu.pipeline_mode<synchronous>, transform_indices = @transform_2, window_bounds = array<i64: 128, 128>}, {pipeline_mode = #tpu.pipeline_mode<synchronous>, transform_indices = @transform_3, window_bounds = array<i64: 128, 128>}, {pipeline_mode = #tpu.pipeline_mode<synchronous>, transform_indices = @transform_4, window_bounds = array<i64: 1, 128>}, {pipeline_mode = #tpu.pipeline_mode<synchronous>, transform_indices = @transform_5, window_bounds = array<i64: 128, 128>}, {pipeline_mode = #tpu.pipeline_mode<synchronous>, transform_indices = @transform_6, window_bounds = array<i64: 1, 128>}, {transform_indices = @transform_7, window_bounds = array<i64: 8, 128>}]} {
    %c0_i32 = arith.constant 0 : i32
    %0 = arith.cmpi eq, %arg1, %c0_i32 : i32
    %1 = arith.extui %0 : i1 to i32
    %c0_i32_0 = arith.constant 0 : i32
    %2 = arith.cmpi ne, %1, %c0_i32_0 : i32
    scf.if %2 {
      %cst_26 = arith.constant 0.000000e+00 : f32
      %68 = vector.broadcast %cst_26 : f32 to vector<8x128xf32>
      %c0_27 = arith.constant 0 : index
      %c0_28 = arith.constant 0 : index
      %69 = vector.load %arg10[%c0_27, %c0_28] : memref<8x128xf32, #tpu.memory_space<vmem>>, vector<8x128xf32>
      tpu.vector_store %arg10[%c0_27, %c0_28], %68 {strides = array<i32>} : memref<8x128xf32, #tpu.memory_space<vmem>>, vector<8x128xf32>,
    } else {
    }
    %c0 = arith.constant 0 : index
    %c0_1 = arith.constant 0 : index
    %c0_2 = arith.constant 0 : index
    %3 = vector.load %arg2[%c0, %c0_1, %c0_2] : memref<4x8x128xbf16, #tpu.memory_space<vmem>>, vector<4x8x128xbf16>
    %4 = arith.extf %3 : vector<4x8x128xbf16> to vector<4x8x128xf32>
    %5 = vector.shape_cast %4 : vector<4x8x128xf32> to vector<32x128xf32>
    %6 = arith.truncf %5 : vector<32x128xf32> to vector<32x128xbf16>
    %c0_3 = arith.constant 0 : index
    %c0_4 = arith.constant 0 : index
    %7 = vector.load %arg4[%c0_3, %c0_4] : memref<128x128xbf16, #tpu.memory_space<vmem>>, vector<128x128xbf16>
    %cst = arith.constant dense<0.000000e+00> : vector<32x128xf32>
    %8 = tpu.matmul %6, %7, %cst {dimension_numbers = #tpu.dot_dimension_numbers<[1], [0], [0], [1], [0, 0, 1, 1], [], []>} : vector<32x128xbf16>, vector<128x128xbf16>, vector<32x128xf32> -> vector<32x128xf32>
    %c0_5 = arith.constant 0 : index
    %c0_6 = arith.constant 0 : index
    %9 = vector.load %arg6[%c0_5, %c0_6] : memref<1x128xf32, #tpu.memory_space<vmem>>, vector<1x128xf32>
    %10 = vector.broadcast %9 : vector<1x128xf32> to vector<32x128xf32>
    %11 = arith.addf %8, %10 : vector<32x128xf32>
    %c0_7 = arith.constant 0 : index
    %c0_8 = arith.constant 0 : index
    %12 = vector.load %arg3[%c0_7, %c0_8] : memref<8x1xi32, #tpu.memory_space<vmem>>, vector<8x1xi32>
    %c0_9 = arith.constant 0 : index
    %c0_10 = arith.constant 0 : index
    %13 = vector.load %arg5[%c0_9, %c0_10] : memref<128x128xbf16, #tpu.memory_space<vmem>>, vector<128x128xbf16>
    %c4_i32 = arith.constant 4 : i32
    %14 = arith.muli %arg1, %c4_i32 : i32
    %c0_11 = arith.constant 0 : index
    %c0_12 = arith.constant 0 : index
    %15 = vector.load %arg10[%c0_11, %c0_12] : memref<8x128xf32, #tpu.memory_space<vmem>>, vector<8x128xf32>
    %16 = vector.extract_strided_slice %11 {offsets = [0, 0], sizes = [8, 128], strides = [1, 1]} : vector<32x128xf32> to vector<8x128xf32>
    %17 = arith.truncf %15 : vector<8x128xf32> to vector<8x128xbf16>
    %cst_13 = arith.constant dense<0.000000e+00> : vector<8x128xf32>
    %18 = tpu.matmul %17, %13, %cst_13 {dimension_numbers = #tpu.dot_dimension_numbers<[1], [0], [0], [1], [0, 0, 1, 1], [], []>} : vector<8x128xbf16>, vector<128x128xbf16>, vector<8x128xf32> -> vector<8x128xf32>
    %19 = arith.addf %16, %18 : vector<8x128xf32>
    %cst_14 = arith.constant 0.000000e+00 : f32
    %20 = vector.broadcast %cst_14 : f32 to vector<8x128xf32>
    %21 = arith.maximumf %19, %20 : vector<8x128xf32>
    %c0_i32_15 = arith.constant 0 : i32
    %22 = arith.addi %14, %c0_i32_15 : i32
    %23 = vector.broadcast %22 : i32 to vector<8x1xi32>
    %24 = arith.cmpi slt, %23, %12 : vector<8x1xi32>
    %25 = vector.shape_cast %24 : vector<8x1xi1> to vector<8x1xi1>
    %26 = vector.broadcast %25 : vector<8x1xi1> to vector<8x128xi1>
    %27 = arith.select %26, %21, %15 : vector<8x128xi1>, vector<8x128xf32>
    %28 = vector.extract_strided_slice %11 {offsets = [8, 0], sizes = [8, 128], strides = [1, 1]} : vector<32x128xf32> to vector<8x128xf32>
    %29 = arith.truncf %27 : vector<8x128xf32> to vector<8x128xbf16>
    %cst_16 = arith.constant dense<0.000000e+00> : vector<8x128xf32>
    %30 = tpu.matmul %29, %13, %cst_16 {dimension_numbers = #tpu.dot_dimension_numbers<[1], [0], [0], [1], [0, 0, 1, 1], [], []>} : vector<8x128xbf16>, vector<128x128xbf16>, vector<8x128xf32> -> vector<8x128xf32>
    %31 = arith.addf %28, %30 : vector<8x128xf32>
    %cst_17 = arith.constant 0.000000e+00 : f32
    %32 = vector.broadcast %cst_17 : f32 to vector<8x128xf32>
    %33 = arith.maximumf %31, %32 : vector<8x128xf32>
    %c1_i32 = arith.constant 1 : i32
    %34 = arith.addi %14, %c1_i32 : i32
    %35 = vector.broadcast %34 : i32 to vector<8x1xi32>
    %36 = arith.cmpi slt, %35, %12 : vector<8x1xi32>
    %37 = vector.shape_cast %36 : vector<8x1xi1> to vector<8x1xi1>
    %38 = vector.broadcast %37 : vector<8x1xi1> to vector<8x128xi1>
    %39 = arith.select %38, %33, %27 : vector<8x128xi1>, vector<8x128xf32>
    %40 = vector.extract_strided_slice %11 {offsets = [16, 0], sizes = [8, 128], strides = [1, 1]} : vector<32x128xf32> to vector<8x128xf32>
    %41 = arith.truncf %39 : vector<8x128xf32> to vector<8x128xbf16>
    %cst_18 = arith.constant dense<0.000000e+00> : vector<8x128xf32>
    %42 = tpu.matmul %41, %13, %cst_18 {dimension_numbers = #tpu.dot_dimension_numbers<[1], [0], [0], [1], [0, 0, 1, 1], [], []>} : vector<8x128xbf16>, vector<128x128xbf16>, vector<8x128xf32> -> vector<8x128xf32>
    %43 = arith.addf %40, %42 : vector<8x128xf32>
    %cst_19 = arith.constant 0.000000e+00 : f32
    %44 = vector.broadcast %cst_19 : f32 to vector<8x128xf32>
    %45 = arith.maximumf %43, %44 : vector<8x128xf32>
    %c2_i32 = arith.constant 2 : i32
    %46 = arith.addi %14, %c2_i32 : i32
    %47 = vector.broadcast %46 : i32 to vector<8x1xi32>
    %48 = arith.cmpi slt, %47, %12 : vector<8x1xi32>
    %49 = vector.shape_cast %48 : vector<8x1xi1> to vector<8x1xi1>
    %50 = vector.broadcast %49 : vector<8x1xi1> to vector<8x128xi1>
    %51 = arith.select %50, %45, %39 : vector<8x128xi1>, vector<8x128xf32>
    %52 = vector.extract_strided_slice %11 {offsets = [24, 0], sizes = [8, 128], strides = [1, 1]} : vector<32x128xf32> to vector<8x128xf32>
    %53 = arith.truncf %51 : vector<8x128xf32> to vector<8x128xbf16>
    %cst_20 = arith.constant dense<0.000000e+00> : vector<8x128xf32>
    %54 = tpu.matmul %53, %13, %cst_20 {dimension_numbers = #tpu.dot_dimension_numbers<[1], [0], [0], [1], [0, 0, 1, 1], [], []>} : vector<8x128xbf16>, vector<128x128xbf16>, vector<8x128xf32> -> vector<8x128xf32>
    %55 = arith.addf %52, %54 : vector<8x128xf32>
    %cst_21 = arith.constant 0.000000e+00 : f32
    %56 = vector.broadcast %cst_21 : f32 to vector<8x128xf32>
    %57 = arith.maximumf %55, %56 : vector<8x128xf32>
    %c3_i32 = arith.constant 3 : i32
    %58 = arith.addi %14, %c3_i32 : i32
    %59 = vector.broadcast %58 : i32 to vector<8x1xi32>
    %60 = arith.cmpi slt, %59, %12 : vector<8x1xi32>
    %61 = vector.shape_cast %60 : vector<8x1xi1> to vector<8x1xi1>
    %62 = vector.broadcast %61 : vector<8x1xi1> to vector<8x128xi1>
    %63 = arith.select %62, %57, %51 : vector<8x128xi1>, vector<8x128xf32>
    %c0_22 = arith.constant 0 : index
    %c0_23 = arith.constant 0 : index
    %64 = vector.load %arg10[%c0_22, %c0_23] : memref<8x128xf32, #tpu.memory_space<vmem>>, vector<8x128xf32>
    tpu.vector_store %arg10[%c0_22, %c0_23], %63 {strides = array<i32>} : memref<8x128xf32, #tpu.memory_space<vmem>>, vector<8x128xf32>,
    %c1_i32_24 = arith.constant 1 : i32
    %65 = arith.cmpi eq, %arg1, %c1_i32_24 : i32
    %66 = arith.extui %65 : i1 to i32
    %c0_i32_25 = arith.constant 0 : i32
    %67 = arith.cmpi ne, %66, %c0_i32_25 : i32
    scf.if %67 {
      %68 = arith.truncf %63 : vector<8x128xf32> to vector<8x128xbf16>
      %c0_26 = arith.constant 0 : index
      %c0_27 = arith.constant 0 : index
      %69 = vector.load %arg7[%c0_26, %c0_27] : memref<128x128xbf16, #tpu.memory_space<vmem>>, vector<128x128xbf16>
      %cst_28 = arith.constant dense<0.000000e+00> : vector<8x128xf32>
      %70 = tpu.matmul %68, %69, %cst_28 {dimension_numbers = #tpu.dot_dimension_numbers<[1], [0], [0], [1], [0, 0, 1, 1], [], []>} : vector<8x128xbf16>, vector<128x128xbf16>, vector<8x128xf32> -> vector<8x128xf32>
      %c0_29 = arith.constant 0 : index
      %c0_30 = arith.constant 0 : index
      %71 = vector.load %arg8[%c0_29, %c0_30] : memref<1x128xf32, #tpu.memory_space<vmem>>, vector<1x128xf32>
      %72 = vector.broadcast %71 : vector<1x128xf32> to vector<8x128xf32>
      %73 = arith.addf %70, %72 : vector<8x128xf32>
      %c0_31 = arith.constant 0 : index
      %c0_32 = arith.constant 0 : index
      %74 = vector.load %arg9[%c0_31, %c0_32] : memref<8x128xf32, #tpu.memory_space<vmem>>, vector<8x128xf32>
      tpu.vector_store %arg9[%c0_31, %c0_32], %73 {strides = array<i32>} : memref<8x128xf32, #tpu.memory_space<vmem>>, vector<8x128xf32>,
    } else {
    }
    return
  }
  func.func @transform_0(%arg0: i32, %arg1: i32) -> (i32, i32, i32) {
    %c0_i32 = arith.constant 0 : i32
    %c0_i32_0 = arith.constant 0 : i32
    return %arg1, %arg0, %c0_i32 : i32, i32, i32
  }
  func.func @transform_1(%arg0: i32, %arg1: i32) -> (i32, i32) {
    %c0_i32 = arith.constant 0 : i32
    %c0_i32_0 = arith.constant 0 : i32
    return %arg0, %c0_i32 : i32, i32
  }
  func.func @transform_2(%arg0: i32, %arg1: i32) -> (i32, i32) {
    %c0_i32 = arith.constant 0 : i32
    %c0_i32_0 = arith.constant 0 : i32
    %c0_i32_1 = arith.constant 0 : i32
    return %c0_i32, %c0_i32_0 : i32, i32
  }
  func.func @transform_3(%arg0: i32, %arg1: i32) -> (i32, i32) {
    %c0_i32 = arith.constant 0 : i32
    %c0_i32_0 = arith.constant 0 : i32
    %c0_i32_1 = arith.constant 0 : i32
    return %c0_i32, %c0_i32_0 : i32, i32
  }
  func.func @transform_4(%arg0: i32, %arg1: i32) -> (i32, i32) {
    %c0_i32 = arith.constant 0 : i32
    %c0_i32_0 = arith.constant 0 : i32
    %c0_i32_1 = arith.constant 0 : i32
    return %c0_i32, %c0_i32_0 : i32, i32
  }
  func.func @transform_5(%arg0: i32, %arg1: i32) -> (i32, i32) {
    %c0_i32 = arith.constant 0 : i32
    %c0_i32_0 = arith.constant 0 : i32
    %c0_i32_1 = arith.constant 0 : i32
    return %c0_i32, %c0_i32_0 : i32, i32
  }
  func.func @transform_6(%arg0: i32, %arg1: i32) -> (i32, i32) {
    %c0_i32 = arith.constant 0 : i32
    %c0_i32_0 = arith.constant 0 : i32
    %c0_i32_1 = arith.constant 0 : i32
    return %c0_i32, %c0_i32_0 : i32, i32
  }
  func.func @transform_7(%arg0: i32, %arg1: i32) -> (i32, i32) {
    %c0_i32 = arith.constant 0 : i32
    %c0_i32_0 = arith.constant 0 : i32
    return %arg0, %c0_i32 : i32, i32
  }
}

</mosaic_0001>

<bundles_post_ra>
// kernel: tpu_custom_call.1
= control target key start
LH: loop header
LB: loop body
LE: loop exit
PB: predicated region body
PF: predicated region fallthrough
CT: control target
= control target key end

     0   :  { %s2008_s0 = inlined_call_operand.hbm [shape: bf16[8,8,128], index: 0, kind: input, shape index: {}]   ;;  %s2009_s1 = inlined_call_operand.vmem [shape: s32[8,1], index: 1, kind: input, shape index: {}]   ;;  %s2010_s2 = inlined_call_operand.hbm [shape: bf16[128,128], index: 2, kind: input, shape index: {}]   ;;  %s2011_s3 = inlined_call_operand.hbm [shape: bf16[128,128], index: 3, kind: input, shape index: {}]   ;;  %s2012_s4 = inlined_call_operand.vmem [shape: f32[1,128], index: 4, kind: input, shape index: {}]   ;;  %s2013_s5 = inlined_call_operand.hbm [shape: bf16[128,128], index: 5, kind: input, shape index: {}]   ;;  %s2014_s6 = inlined_call_operand.vmem [shape: f32[1,128], index: 6, kind: input, shape index: {}]   ;;  %s2015_s7 = inlined_call_operand.hbm [shape: f32[8,128], index: 7, kind: output, shape index: {}]  }
   0x1   :  { %2022 = sst [smem:[#allocation16_spill]] %s2015_s7 }
   0x2   :  { %12 = vsyncpa [#allocation4], 0 }
   0x3   :  { %14 = vsyncpa [#allocation4 + $0x1], 0 }
   0x4   :  { %15 = vsyncpa [#allocation7], 0 }
   0x5   :  { %16 = vsyncpa [#allocation10], 0 }
   0x6   :  { %17 = vsyncpa [#allocation5], 0  ;;  %s1623_s24 = smov 0   ;;  %s1625_s25 = smov 0  }
   0x7   :  { %s1627_s26 = smov 0   ;;  %s1629_s27 = smov 0  }
   0x8   :  { %s1631_s28 = smov 0   ;;  %s1633_s29 = smov 0  }
   0x9 LB: > { %s2018_s30 = sadd.s32 4294967295, %s1568_s29   ;;  %p57_p0 = scmp.ne.s32.totalorder %s1552_s25, %s1548_s24  ;;  %s1568_s29 = sphi %s1633_s29, %s23_s29   ;;  %s1564_s28 = sphi %s1631_s28, %s2039_s28   ;;  %s1560_s27 = sphi %s1629_s27, %s2038_s27   ;;  %s1556_s26 = sphi %s1627_s26, %s2037_s26   ;;  %s1552_s25 = sphi %s1625_s25, %s2036_s25   ;;  %s1548_s24 = sphi %s1623_s24, %s2035_s24  }
   0xa   : > { %p1655_p1 = scmp.eq.s32.totalorder %s2018_s30, 0  ;;  %p1012_p2 = scmp.ge.s32.totalorder %s1568_s29, 1 }
   0xb   : > { %p225_p3 = scmp.lt.s32.totalorder %s1568_s29, 3  ;;  %s1570_s11 = smov [#allocation6]  }
   0xc   : > { %s2023_s8 = scalar_select %p1655_p1, 1, 0 }
   0xd   : > { %p1663_p4 = por %p1655_p1, %p57_p0  ;;  %p1667_p5 = pnand %p1012_p2, %p225_p3 }
   0xe   : > { %s244_s12 = sshll.u32 %s1570_s11, 4  ;;  %s1571_s14 = smov [#allocation8]   ;;  %s1671_s12 = int_to_ptr.vmem [resolvable:$true] %s244_s12 }
   0xf   : > { %s2024_s9 = scalar_select %p1663_p4, 1, 0 }
  0x10   : > { %s2025_s10 = scalar_select %p1667_p5, 1, 0 }
  0x11   : > { %p1255_p6 = pneg %p1667_p5  ;;  %s257_s15 = sshll.u32 %s1571_s14, 4  ;;  %s1681_s15 = int_to_ptr.vmem [resolvable:$true] %s257_s15 }
  0x12   : > { %s1572_s16 = smov [#allocation9]   ;;  %s1366_s20 = scalar_lea.hbm %s2010_s2, 1024 }
  0x13   : > { %p1677_p7 = pnand %p1255_p6, %p1655_p1  ;;  %s1683_s17 = sshll.u32 %s1572_s16, 4  ;;  %s274_s17 = int_to_ptr.vmem [resolvable:$true] %s1683_s17 }
  0x14   : > { %p1367_p8 = scmp.ne.s32.totalorder %s2010_s2, %s1366_s20  ;;  %p1373_p12 = scmp.lt.u32.totalorder %s1366_s20, %s2010_s2 }
  0x15   : > { %p1693_p9 = pneg %p1677_p7 }
  0x17   : > { %p1369_p10 = pnand %p1693_p9, %p1367_p8 }
  0x19   : > { %p1370_p11 = pneg %p1369_p10 }
  0x1b   : > { %p1375_p13 = pnand %p1373_p12, %p1370_p11 }
  0x1d   : > { %1378 = shalt.err (!%p1375_p13)
}
  0x1e   : > { %s1379_s14 = scalar_lea.vmem %s1671_s12, 1024  ;;  %p1387_p6 = scmp.lt.s32.totalorder %s1671_s12, %s1671_s12 }
  0x1f   : > { %p1380_p0 = scmp.ne.s32.totalorder %s1671_s12, %s1379_s14  ;;  %p1388_p1 = scmp.lt.s32.totalorder %s1379_s14, %s1379_s14 }
  0x21   : > { %p1382_p2 = pnand %p1380_p0, %p1693_p9  ;;  %p1389_p8 = por %p1388_p1, %p1387_p6 }
  0x23   : > { %p1383_p3 = pneg %p1382_p2 }
  0x25   : > { %p1390_p10 = pnand %p1389_p8, %p1383_p3 }
  0x27   : > { %1393 = shalt.err (!%p1390_p10)
}
  0x28   : > { %s1573_s16 = smov 64   ;;  %s1574_s18 = smov 4  }
  0x29   : > { %1258 = dma.hbm_to_vmem [thread:$0]  (!%p1677_p7), %s2010_s2, 1024, %s1671_s12, [#allocation7], %s1573_s16, %s1573_s16, %s1574_s18  }
  0x2a   : > { %s1394_s24 = scalar_lea.hbm %s2011_s3, 1024 }
  0x2b   : > { %p1395_p1 = scmp.ne.s32.totalorder %s2011_s3, %s1394_s24  ;;  %p1401_p13 = scmp.lt.u32.totalorder %s1394_s24, %s2011_s3 }
  0x2d   : > { %p1397_p11 = pnand %p1395_p1, %p1693_p9 }
  0x2f   : > { %p1398_p12 = pneg %p1397_p11 }
  0x31   : > { %p1403_p0 = pnand %p1401_p13, %p1398_p12 }
  0x33   : > { %1406 = shalt.err (!%p1403_p0)
}
  0x34   : > { %s1407_s12 = scalar_lea.vmem %s1681_s15, 1024  ;;  %p1415_p8 = scmp.lt.s32.totalorder %s1681_s15, %s1681_s15 }
  0x35   : > { %p1408_p2 = scmp.ne.s32.totalorder %s1681_s15, %s1407_s12  ;;  %p1416_p10 = scmp.lt.s32.totalorder %s1407_s12, %s1407_s12 }
  0x37   : > { %p1410_p3 = pnand %p1408_p2, %p1693_p9  ;;  %p1417_p1 = por %p1416_p10, %p1415_p8 }
  0x39   : > { %p1411_p6 = pneg %p1410_p3 }
  0x3b   : > { %p1418_p11 = pnand %p1417_p1, %p1411_p6 }
  0x3d   : > { %1421 = shalt.err (!%p1418_p11)
}
  0x3e   : > { %1261 = dma.hbm_to_vmem [thread:$0]  (!%p1677_p7), %s2011_s3, 1024, %s1681_s15, [#allocation7], %s1573_s16, %s1573_s16, %s1574_s18  }
  0x3f   : > { %s1422_s21 = scalar_lea.hbm %s2013_s5, 1024 }
  0x40   : > { %p1423_p12 = scmp.ne.s32.totalorder %s2013_s5, %s1422_s21  ;;  %p1429_p2 = scmp.lt.u32.totalorder %s1422_s21, %s2013_s5 }
  0x42   : > { %p1425_p13 = pnand %p1423_p12, %p1693_p9 }
  0x44   : > { %p1426_p0 = pneg %p1425_p13 }
  0x46   : > { %p1431_p3 = pnand %p1429_p2, %p1426_p0 }
  0x48   : > { %1434 = shalt.err (!%p1431_p3)
}
  0x49   : > { %s1435_s12 = scalar_lea.vmem %s274_s17, 1024  ;;  %p1443_p1 = scmp.lt.s32.totalorder %s274_s17, %s274_s17 }
  0x4a   : > { %p1436_p6 = scmp.ne.s32.totalorder %s274_s17, %s1435_s12  ;;  %p1444_p11 = scmp.lt.s32.totalorder %s1435_s12, %s1435_s12 }
  0x4c   : > { %p1438_p8 = pnand %p1436_p6, %p1693_p9  ;;  %p1445_p4 = por %p1444_p11, %p1443_p1 }
  0x4e   : > { %p1439_p10 = pneg %p1438_p8 }
  0x50   : > { %p1446_p5 = pnand %p1445_p4, %p1439_p10 }
  0x52   : > { %1449 = shalt.err (!%p1446_p5)
}
  0x53   : > { %1264 = dma.hbm_to_vmem [thread:$0]  (!%p1677_p7), %s2013_s5, 1024, %s274_s17, [#allocation10], %s1573_s16, %s1573_s16, %s1574_s18  }
  0x54   : > { %s32_s23 = sadd.s32 1, %s1564_s28  ;;  %p51_p4 = scmp.ne.s32.totalorder %s1556_s26, %s1552_s25 }
  0x55   : > { %p33_p5 = scmp.ge.s32.totalorder %s32_s23, 2  ;;  %p52_p9 = scmp.eq.s32.totalorder %s1568_s29, 0 }
  0x56   : > { %s44_s13 = sadd.s32 1, %s1556_s26  ;;  %s290_s30 = sand.u32 1, %s1556_s26  }
  0x57   : > { %s2041_s23 = smov (%p33_p5, %s32_s23), 0  ;;  %p53_p12 = por %p52_p9, %p51_p4 }
  0x58   : > { %p1272_p13 = scmp.lt.s32.totalorder %s1568_s29, 2  ;;  %s39_s19 = ssub.s32 %s1564_s28, %s2041_s23 }
  0x59   : > { %s1018_s20 = sshll.u32 %s290_s30, 4  ;;  %p42_p0 = scmp.eq.s32.totalorder %s39_s19, 0 }
  0x5a   : > { %s1061_s21 = sshll.u32 %s1564_s28, 8  ;;  %s294_s22 = scalar_lea.vmem [#allocation3], %s1018_s20 }
  0x5b   : > { %s302_s24 = sshll.u32 %s294_s22, 4  ;;  %s1783_s12 = scalar_lea.hbm %s2008_s0, %s1061_s21  ;;  %s1785_s24 = int_to_ptr.vmem [resolvable:$true] %s302_s24 }
  0x5c   : > { %s1778_s11 = scalar_select %p42_p0, %s1556_s26, %s44_s13  }
  0x5d   : > { %p1787_p7 = pnand %p1272_p13, %p53_p12  ;;  %s1791_s7 = scalar_lea.sflag [#allocation4], %s290_s30 }
  0x5e   : > { %s1450_s13 = scalar_lea.hbm %s1783_s12, 256  ;;  %s1455_s21 = scalar_lea.hbm %s2008_s0, 512 }
  0x5f   : > { %p1451_p2 = scmp.ne.s32.totalorder %s1783_s12, %s1450_s13  ;;  %p1452_p3 = pneg %p1787_p7 }
  0x60   : > { %p1456_p10 = scmp.lt.u32.totalorder %s1783_s12, %s2008_s0  ;;  %p1457_p1 = scmp.lt.u32.totalorder %s1455_s21, %s1450_s13 }
  0x61   : > { %p1453_p6 = pnand %p1452_p3, %p1451_p2  ;;  %p1459_p4 = scmp.lt.u32.totalorder %s1450_s13, %s1783_s12 }
  0x62   : > { %p1458_p11 = por %p1457_p1, %p1456_p10 }
  0x63   : > { %p1454_p8 = pneg %p1453_p6 }
  0x64   : > { %p1460_p5 = por %p1459_p4, %p1458_p11 }
  0x66   : > { %p1461_p9 = pnand %p1460_p5, %p1454_p8 }
  0x68   : > { %1464 = shalt.err (!%p1461_p9)
}
  0x69   : > { %s1465_s30 = scalar_lea.vmem %s1785_s24, 256  ;;  %s1575_s14 = smov [#allocation3]  }
  0x6a   : > { %p1466_p12 = scmp.ne.s32.totalorder %s1785_s24, %s1465_s30  ;;  %s1470_s19 = sshll.u32 %s1575_s14, 4  ;;  %s1471_s19 = int_to_ptr.vmem [resolvable:$false] %s1470_s19 }
  0x6b   : > { %s1472_s20 = scalar_lea.vmem %s1471_s19, 512  ;;  %p1473_p2 = scmp.lt.s32.totalorder %s1785_s24, %s1471_s19 }
  0x6c   : > { %p1468_p13 = pnand %p1466_p12, %p1452_p3  ;;  %p1474_p6 = scmp.lt.s32.totalorder %s1472_s20, %s1465_s30 }
  0x6e   : > { %p1469_p0 = pneg %p1468_p13  ;;  %p1475_p10 = por %p1474_p6, %p1473_p2 }
  0x70   : > { %p1476_p1 = pnand %p1475_p10, %p1469_p0 }
  0x72   : > { %1479 = shalt.err (!%p1476_p1)
}
  0x73   : > { %1268 = dma.hbm_to_vmem [thread:$0]  (!%p1787_p7), %s1783_s12, 256, %s1785_s24, %s1791_s7, %s1573_s16, %s1573_s16, %s1574_s18  }
  0x74   : > { %p2029_p3 = scmp.ne.s32.totalorder %s2025_s10, 0 }
  0x75   : > { %s316_s13 = sand.u32 (!%p2029_p3), 1, %s1552_s25   ;;  %p2030_p8 = scmp.ne.s32.totalorder (!%p2029_p3), %s2024_s9, 0 }
  0x76   : > { %314 = sbr.rel (%p2029_p3) target bundleno = 1298 (0x512), region = 48  ;;  %s1825_s21 = sshll.u32 (!%p2029_p3), %s316_s13, 4 }
  0x77   : > { %s317_s22 = scalar_lea.sflag (!%p2029_p3), [#allocation4], %s316_s13  ;;  %s320_s17 = scalar_lea.vmem (!%p2029_p3), [#allocation3], %s1825_s21 }
  0x7d   : > { %1531 = dma.done.wait (%p2030_p8), %s317_s22, 256  }
  0x7e   : > { %1533 = vsyncadd (%p2030_p8), %s317_s22, 4294967040  ;;  %p2031_p11 = scmp.ne.s32.totalorder %s2023_s8, 0 }
  0x80   : > { %1535 = dma.done.wait (%p2031_p11), [#allocation7], 2048  }
  0x81   : > { %1537 = vsyncadd (%p2031_p11), [#allocation7], 4294965248 }
  0x82   : > { %1539 = dma.done.wait (%p2031_p11), [#allocation10], 1024  }
  0x83   : > { %1541 = vsyncadd (%p2031_p11), [#allocation10], 4294966272  ;;  %p1026_p7 = scmp.ne.s32.totalorder %s1560_s27, 0 }
  0x84   : > { %v1576_v0 = vmov (!%p1026_p7), 0.0  }
  0x85   : > { %371 = sbr.rel (%p1026_p7) target bundleno = 140 (0x8c), region = 68  ;;  %372 = vst [vmem:[#allocation2] sm:$0xff] (!%p1026_p7), %v1576_v0 }
  0x8c PF: > { %v1340_v1 = vld [vmem:[#allocation6] sm:$0xff]   ;;  %v1577_v2 = vmov 0.0   ;;  %v1342_v4 = vld [vmem:[#allocation6 + $0x8] sm:$0xff]   ;;  %vm1578_vm0 = vmmov 0   ;;  %v1344_v6 = vld [vmem:[#allocation6 + $0x10] sm:$0xff]   ;;  %v1579_v7 = vmov 0  }
  0x8d   : > { %1137 = vmatprep.subr.bf16.mxu1 %v1577_v2  ;;  %v1842_v3 = vld [vmem:[#allocation8] sm:$0xff]   ;;  %1117 = vmatprep.subr.bf16.mxu0 %v1340_v1  ;;  %v1847_v5 = vld [vmem:[#allocation8 + $0x8] sm:$0xff]   ;;  %v1853_v8 = vld [vmem:[#allocation8 + $0x10] sm:$0xff]   ;;  %s1861_s8 = sshll.u32 %s1560_s27, 2  ;;  %p1047_p4 = scmp.ne.s32.totalorder %s1560_s27, 1 }
  0x8e   : > { %1153 = vmatprep.mubr.msk.bf16.mxu1 %vm1578_vm0, %v1577_v2  ;;  %1118 = vmatpush3.bf16.msra.mxu0 %v1340_v1  ;;  %v1346_v9 = vld [vmem:[#allocation6 + $0x18] sm:$0xff]   ;;  %v1348_v11 = vld [vmem:[#allocation6 + $0x20] sm:$0xff]   ;;  %s664_s9 = sadd.s32 1, %s1861_s8  ;;  %v1350_v13 = vld [vmem:[#allocation6 + $0x28] sm:$0xff]   ;;  %v613_v14 = vstv %s1861_s8  ;;  %s716_s12 = sadd.s32 2, %s1861_s8  ;;  %vm1581_vm9 = vmmov (!%p1047_p4), 0  }
  0x8f   : > { %1138 = vmatpush3.bf16.msra.mxu1 %v1842_v3  ;;  %1119 = vmatprep.subr.bf16.mxu0 %v1342_v4  ;;  %v1857_v10 = vld [vmem:[#allocation8 + $0x18] sm:$0xff]   ;;  %v1864_v12 = vld [vmem:[#allocation8 + $0x20] sm:$0xff]   ;;  %v665_v16 = vstv %s664_s9  ;;  %v1877_v18 = vld [vmem:[#allocation8 + $0x28] sm:$0xff]   ;;  %s768_s15 = sadd.s32 3, %s1861_s8  ;;  %v717_v46 = vstv %s716_s12 }
  0x90   : > { %1139 = vmatprep.subr.bf16.mxu1 %v1577_v2  ;;  %1338 = vset.pattern.permute.xlu0 %v1579_v7  ;;  %v1356_v15 = vld [vmem:[%s320_s17] sm:$0xff]   ;;  %v1874_v17 = vld [vmem:[%s2009_s1] sm:$0xff]  ;;  %v769_v47 = vstv %s768_s15 }
  0x91   : > { %1339 = vset.pattern.permute.xlu1 %v1579_v7  ;;  %1133 = vmatprep.mubr.bf16.mxu0 %v1356_v15  ;;  %vm614_vm1 = vcmp.lt.s32.totalorder %v613_v14, %v1874_v17  ;;  %vm666_vm2 = vcmp.lt.s32.totalorder %v665_v16, %v1874_v17  ;;  %v1352_v19 = vld [vmem:[#allocation6 + $0x30] sm:$0xff]   ;;  %v1354_v23 = vld [vmem:[#allocation6 + $0x38] sm:$0xff]   ;;  %vm718_vm4 = vcmp.lt.s32.totalorder %v717_v46, %v1874_v17  ;;  %v1359_v14 = vld [vmem:[#allocation9 + $0x8] sm:$0xff] (!%p1047_p4)  }
  0x92   : > { %1120 = vmatpush3.bf16.msra.mxu0 %v1342_v4  ;;  %v615_v20 = vsel %vm614_vm1, 1, %v1579_v7  ;;  %v667_v21 = vsel %vm666_vm2, 1, %v1579_v7  ;;  %v1885_v22 = vld [vmem:[#allocation8 + $0x30] sm:$0xff]   ;;  %v1889_v24 = vld [vmem:[#allocation8 + $0x38] sm:$0xff]   ;;  %vm770_vm5 = vcmp.lt.s32.totalorder %v769_v47, %v1874_v17  ;;  %v719_v48 = vsel %vm718_vm4, 1, %v1579_v7  ;;  %v1362_v17 = vld [vmem:[#allocation9 + $0x20] sm:$0xff] (!%p1047_p4)  }
  0x93   : > { %1140 = vmatpush3.bf16.msra.mxu1 %v1847_v5  ;;  %1121 = vmatprep.subr.bf16.mxu0 %v1344_v6  ;;  %v521_v25 = vld [vmem:[#allocation2] sm:$0xff]  ;;  %v771_v49 = vsel %vm770_vm5, 1, %v1579_v7  ;;  %v1360_v15 = vld [vmem:[#allocation9 + $0x10] sm:$0xff] (!%p1047_p4)  }
  0x94   : > { %1141 = vmatprep.subr.bf16.mxu1 %v1577_v2  ;;  %617 = vperm.xlu0 %1338, %v615_v20   ;;  %v1357_v26 = vld [vmem:[%s320_s17 + $0x8] sm:$0xff]   ;;  %v522_v27 = vpack.c.bf16 %v521_v25, %v521_v25 }
  0x95   : > { %v1029_v28 = vld [vmem:[%s2012_s4] ss:$0 sm:$0xff]  ;;  %721 = vperm.xlu1 %1339, %v719_v48  }
  0x96   : > { %1122 = vmatpush3.bf16.msra.mxu0 %v1344_v6  ;;  %v1361_v16 = vld [vmem:[#allocation9 + $0x18] sm:$0xff] (!%p1047_p4)  }
  0x97   : > { %1142 = vmatpush3.bf16.msra.mxu1 %v1853_v8  ;;  %1123 = vmatprep.subr.bf16.mxu0 %v1346_v9  ;;  %v1365_v20 = vld [vmem:[#allocation9 + $0x38] sm:$0xff] (!%p1047_p4)  }
  0x98   : > { %1143 = vmatprep.subr.bf16.mxu1 %v1577_v2  ;;  %669 = vperm.xlu0 %1338, %v667_v21  }
  0x99   : > { %773 = vperm.xlu1 %1339, %v771_v49  }
  0x9a   : > { %1124 = vmatpush3.bf16.msra.mxu0 %v1346_v9 }
  0x9b   : > { %1144 = vmatpush3.bf16.msra.mxu1 %v1857_v10  ;;  %1125 = vmatprep.subr.bf16.mxu0 %v1348_v11 }
  0x9c   : > { %1145 = vmatprep.subr.bf16.mxu1 %v1577_v2 }
  0x9e   : > { %1126 = vmatpush3.bf16.msra.mxu0 %v1348_v11 }
  0x9f   : > { %1146 = vmatpush3.bf16.msra.mxu1 %v1864_v12  ;;  %1127 = vmatprep.subr.bf16.mxu0 %v1350_v13 }
  0xa0   : > { %1147 = vmatprep.subr.bf16.mxu1 %v1577_v2 }
  0xa2   : > { %1128 = vmatpush3.bf16.msra.mxu0 %v1350_v13  ;;  %v1580_v13 = vmov (!%p1047_p4), 0.0  }
  0xa3   : > { %1148 = vmatpush3.bf16.msra.mxu1 %v1877_v18  ;;  %1129 = vmatprep.subr.bf16.mxu0 %v1352_v19 }
  0xa4   : > { %1149 = vmatprep.subr.bf16.mxu1 %v1577_v2 }
  0xa6   : > { %1130 = vmatpush3.bf16.msra.mxu0 %v1352_v19  ;;  %v1364_v19 = vld [vmem:[#allocation9 + $0x30] sm:$0xff] (!%p1047_p4)  }
  0xa7   : > { %1150 = vmatpush3.bf16.msra.mxu1 %v1885_v22  ;;  %1131 = vmatprep.subr.bf16.mxu0 %v1354_v23 }
  0xa8   : > { %1151 = vmatprep.subr.bf16.mxu1 %v1577_v2 }
  0xaa   : > { %1132 = vmatpush3.bf16.msra.mxu0 %v1354_v23 }
  0xab   : > { %1152 = vmatpush3.bf16.msra.mxu1 %v1889_v24  ;;  %1157 = vmatprep.subr.bf16.mxu0 %v1577_v2 }
  0xac   : > { %1177 = vmatprep.subr.bf16.mxu1 %v1577_v2 }
  0xad   : > { %1134 = vmatmul.mubr.bf16.vlgmr.msra.gmra.mrb[0].mxu0 %v1357_v26 }
  0xae   : > { %1154 = vmatmul.mubr.bf16.vlgmr.msra.gmra.mrb[0].mxu1 %v522_v27  ;;  %1158 = vmatpush3.bf16.msra.mxu0 %v1842_v3 }
  0xaf   : > { %1173 = vmatprep.mubr.msk.bf16.mxu0 %vm1578_vm0, %v1577_v2  ;;  %1159 = vmatprep.subr.bf16.mxu0 %v1577_v2 }
  0xb0   : > { %1178 = vmatpush3.bf16.msra.mxu1 %v1842_v3  ;;  %1193 = vmatprep.mubr.msk.bf16.mxu1 %vm1578_vm0, %v1577_v2 }
  0xb1   : > { %1179 = vmatprep.subr.bf16.mxu1 %v1577_v2 }
  0xb2   : > { %1160 = vmatpush3.bf16.msra.mxu0 %v1847_v5 }
  0xb3   : > { %1161 = vmatprep.subr.bf16.mxu0 %v1577_v2 }
  0xb4   : > { %1180 = vmatpush3.bf16.msra.mxu1 %v1847_v5 }
  0xb5   : > { %1181 = vmatprep.subr.bf16.mxu1 %v1577_v2 }
  0xb6   : > { %1162 = vmatpush3.bf16.msra.mxu0 %v1853_v8 }
  0xb7   : > { %1163 = vmatprep.subr.bf16.mxu0 %v1577_v2 }
  0xb8   : > { %1182 = vmatpush3.bf16.msra.mxu1 %v1853_v8 }
  0xb9   : > { %1183 = vmatprep.subr.bf16.mxu1 %v1577_v2 }
  0xba   : > { %1164 = vmatpush3.bf16.msra.mxu0 %v1857_v10 }
  0xbb   : > { %1165 = vmatprep.subr.bf16.mxu0 %v1577_v2 }
  0xbc   : > { %1184 = vmatpush3.bf16.msra.mxu1 %v1857_v10 }
  0xbd   : > { %1185 = vmatprep.subr.bf16.mxu1 %v1577_v2 }
  0xbe   : > { %1166 = vmatpush3.bf16.msra.mxu0 %v1864_v12 }
  0xbf   : > { %1167 = vmatprep.subr.bf16.mxu0 %v1577_v2 }
  0xc0   : > { %1186 = vmatpush3.bf16.msra.mxu1 %v1864_v12 }
  0xc1   : > { %1187 = vmatprep.subr.bf16.mxu1 %v1577_v2 }
  0xc2   : > { %1168 = vmatpush3.bf16.msra.mxu0 %v1877_v18 }
  0xc3   : > { %1169 = vmatprep.subr.bf16.mxu0 %v1577_v2 }
  0xc4   : > { %1188 = vmatpush3.bf16.msra.mxu1 %v1877_v18 }
  0xc5   : > { %1189 = vmatprep.subr.bf16.mxu1 %v1577_v2 }
  0xc6   : > { %1170 = vmatpush3.bf16.msra.mxu0 %v1885_v22 }
  0xc7   : > { %1171 = vmatprep.subr.bf16.mxu0 %v1577_v2 }
  0xc8   : > { %1190 = vmatpush3.bf16.msra.mxu1 %v1885_v22 }
  0xc9   : > { %1191 = vmatprep.subr.bf16.mxu1 %v1577_v2 }
  0xca   : > { %1172 = vmatpush3.bf16.msra.mxu0 %v1889_v24 }
  0xcb   : > { %1197 = vmatprep.subr.bf16.mxu0 %v1577_v2 }
  0xcc   : > { %1192 = vmatpush3.bf16.msra.mxu1 %v1889_v24 }
 0x113   : > { %v618_v41 = vpop.permute.xlu0 %617 }
 0x114   : > { %vm619_vm3 = vcmp.eq.s32.totalorder %v618_v41, 1  ;;  %v722_v60 = vpop.permute.xlu1 %721 }
 0x115   : > { %vm723_vm7 = vcmp.eq.s32.totalorder %v722_v60, 1 }
 0x117   : > { %v670_v51 = vpop.permute.xlu0 %669 }
 0x118   : > { %vm671_vm6 = vcmp.eq.s32.totalorder %v670_v51, 1 }
 0x180   : > { %v1135_v29 = vpop.f32.mrb[0].mxu0 }
 0x181   : > { %v605_v30 = vpop.f32.mrb[0].mxu1  ;;  %v497_v31 = vadd.f32 %v1135_v29, %v1029_v28  ;;  %v488_v32 = vpop.f32.mrb[1].mxu0 }
 0x182   : > { %v1155_v33 = vpop.f32.mrb[1].mxu1  ;;  %v489_v34 = vadd.f32 %v1029_v28, %v488_v32  ;;  %v1136_v36 = vpop.f32.mrb[2].mxu0 }
 0x183   : > { %v608_v35 = vpop.f32.mrb[2].mxu1  ;;  %v500_v37 = vadd.f32 %v1136_v36, %v1029_v28  ;;  %v491_v38 = vpop.f32.mrb[3].mxu0 }
 0x184   : > { %v1156_v39 = vpop.f32.mrb[3].mxu1  ;;  %v611_v40 = vadd.f32 %v605_v30, %v489_v34  ;;  %v492_v42 = vadd.f32 %v1029_v28, %v491_v38 }
 0x186   : > { %v612_v43 = vmax.f32 %v611_v40, 0.0 }
 0x188   : > { %v620_v44 = vsel %vm619_vm3, %v612_v43, %v521_v25 }
 0x189   : > { %v621_v45 = vpack.c.bf16 %v620_v44, %v620_v44 }
 0x18b   : > { %1174 = vmatmul.mubr.bf16.vlgmr.msra.gmra.mrb[4].mxu0 %v621_v45 }
 0x18c   : > { %1198 = vmatpush3.bf16.msra.mxu0 %v1842_v3  ;;  %1213 = vmatprep.mubr.msk.bf16.mxu0 %vm1578_vm0, %v1577_v2 }
 0x18d   : > { %1199 = vmatprep.subr.bf16.mxu0 %v1577_v2 }
 0x190   : > { %1200 = vmatpush3.bf16.msra.mxu0 %v1847_v5  ;;  %v774_v5 = vpop.permute.xlu1 %773 }
 0x191   : > { %1201 = vmatprep.subr.bf16.mxu0 %v1577_v2  ;;  %vm775_vm8 = vcmp.eq.s32.totalorder %v774_v5, 1 }
 0x194   : > { %1202 = vmatpush3.bf16.msra.mxu0 %v1853_v8 }
 0x195   : > { %1203 = vmatprep.subr.bf16.mxu0 %v1577_v2 }
 0x198   : > { %1204 = vmatpush3.bf16.msra.mxu0 %v1857_v10 }
 0x199   : > { %1205 = vmatprep.subr.bf16.mxu0 %v1577_v2 }
 0x19c   : > { %1206 = vmatpush3.bf16.msra.mxu0 %v1864_v12  ;;  %v1358_v12 = vld [vmem:[#allocation9] sm:$0xff] (!%p1047_p4)  }
 0x19d   : > { %1207 = vmatprep.subr.bf16.mxu0 %v1577_v2 }
 0x1a0   : > { %1208 = vmatpush3.bf16.msra.mxu0 %v1877_v18  ;;  %v1363_v18 = vld [vmem:[#allocation9 + $0x28] sm:$0xff] (!%p1047_p4)  }
 0x1a1   : > { %1209 = vmatprep.subr.bf16.mxu0 %v1577_v2 }
 0x1a4   : > { %1210 = vmatpush3.bf16.msra.mxu0 %v1885_v22  ;;  %v1048_v22 = vld [vmem:[%s2014_s6] ss:$0 sm:$0xff] (!%p1047_p4) }
 0x1a5   : > { %1211 = vmatprep.subr.bf16.mxu0 %v1577_v2 }
 0x1a8   : > { %1212 = vmatpush3.bf16.msra.mxu0 %v1889_v24 }
 0x1a9   : > { %1217 = vmatprep.subr.bf16.mxu0 (!%p1047_p4), %v1580_v13 }
 0x25e   : > { %v656_v50 = vpop.f32.mrb[4].mxu0 }
 0x25f   : > { %v662_v52 = vadd.f32 %v656_v50, %v492_v42  ;;  %v1175_v53 = vpop.f32.mrb[5].mxu0 }
 0x260   : > { %v659_v54 = vpop.f32.mrb[6].mxu0 }
 0x261   : > { %v663_v55 = vmax.f32 %v662_v52, 0.0  ;;  %v1176_v56 = vpop.f32.mrb[7].mxu0 }
 0x263   : > { %v672_v57 = vsel %vm671_vm6, %v663_v55, %v620_v44 }
 0x264   : > { %v673_v58 = vpack.c.bf16 %v672_v57, %v672_v57 }
 0x266   : > { %1194 = vmatmul.mubr.bf16.vlgmr.msra.gmra.mrb[4].mxu1 %v673_v58 }
 0x339   : > { %v708_v59 = vpop.f32.mrb[4].mxu1 }
 0x33a   : > { %v714_v61 = vadd.f32 %v708_v59, %v497_v31  ;;  %v1195_v62 = vpop.f32.mrb[5].mxu1 }
 0x33b   : > { %v711_v63 = vpop.f32.mrb[6].mxu1 }
 0x33c   : > { %v715_v0 = vmax.f32 %v714_v61, 0.0  ;;  %v1196_v1 = vpop.f32.mrb[7].mxu1 }
 0x33e   : > { %v724_v2 = vsel %vm723_vm7, %v715_v0, %v672_v57 }
 0x33f   : > { %v725_v3 = vpack.c.bf16 %v724_v2, %v724_v2 }
 0x341   : > { %1214 = vmatmul.mubr.bf16.vlgmr.msra.gmra.mrb[8].mxu0 %v725_v3 }
 0x342   : > { %1218 = vmatpush3.bf16.msra.mxu0 (!%p1047_p4), %v1358_v12  ;;  %1233 = vmatprep.mubr.msk.bf16.mxu0 (!%p1047_p4), %vm1581_vm9, %v1580_v13 }
 0x343   : > { %1219 = vmatprep.subr.bf16.mxu0 (!%p1047_p4), %v1580_v13 }
 0x346   : > { %1220 = vmatpush3.bf16.msra.mxu0 (!%p1047_p4), %v1359_v14 }
 0x347   : > { %1221 = vmatprep.subr.bf16.mxu0 (!%p1047_p4), %v1580_v13 }
 0x34a   : > { %1222 = vmatpush3.bf16.msra.mxu0 (!%p1047_p4), %v1360_v15 }
 0x34b   : > { %1223 = vmatprep.subr.bf16.mxu0 (!%p1047_p4), %v1580_v13 }
 0x34e   : > { %1224 = vmatpush3.bf16.msra.mxu0 (!%p1047_p4), %v1361_v16 }
 0x34f   : > { %1225 = vmatprep.subr.bf16.mxu0 (!%p1047_p4), %v1580_v13 }
 0x352   : > { %1226 = vmatpush3.bf16.msra.mxu0 (!%p1047_p4), %v1362_v17 }
 0x353   : > { %1227 = vmatprep.subr.bf16.mxu0 (!%p1047_p4), %v1580_v13 }
 0x356   : > { %1228 = vmatpush3.bf16.msra.mxu0 (!%p1047_p4), %v1363_v18 }
 0x357   : > { %1229 = vmatprep.subr.bf16.mxu0 (!%p1047_p4), %v1580_v13 }
 0x35a   : > { %1230 = vmatpush3.bf16.msra.mxu0 (!%p1047_p4), %v1364_v19 }
 0x35b   : > { %1231 = vmatprep.subr.bf16.mxu0 (!%p1047_p4), %v1580_v13 }
 0x35e   : > { %1232 = vmatpush3.bf16.msra.mxu0 (!%p1047_p4), %v1365_v20 }
 0x414   : > { %v760_v4 = vpop.f32.mrb[8].mxu0  ;;  %781 = sbr.rel (%p1047_p4) target bundleno = 1267 (0x4f3), region = 72 }
 0x415   : > { %v766_v6 = vadd.f32 %v760_v4, %v500_v37  ;;  %v1215_v7 = vpop.f32.mrb[9].mxu0 }
 0x416   : > { %v763_v8 = vpop.f32.mrb[10].mxu0 }
 0x417   : > { %v767_v9 = vmax.f32 %v766_v6, 0.0  ;;  %v1216_v10 = vpop.f32.mrb[11].mxu0 }
 0x419   : > { %v776_v11 = vsel %vm775_vm8, %v767_v9, %v724_v2 }
 0x41a   : > { %777 = vst [vmem:[#allocation2] sm:$0xff] %v776_v11  ;;  %v782_v21 = vpack.c.bf16 (!%p1047_p4), %v776_v11, %v776_v11 }
 0x41c   : > { %1234 = vmatmul.mubr.bf16.vlgmr.msra.gmra.mrb[0].mxu0 %v782_v21 }
 0x4ef   : > { %v888_v23 = vpop.f32.mrb[0].mxu0 }
 0x4f0   : > { %v889_v24 = vadd.f32 %v1048_v22, %v888_v23  ;;  %v1235_v25 = vpop.f32.mrb[1].mxu0 }
 0x4f1   : > { %v891_v26 = vpop.f32.mrb[2].mxu0 }
 0x4f2   : > { %894 = vst [vmem:[#allocation11] sm:$0xff] %v889_v24  ;;  %v1236_v27 = vpop.f32.mrb[3].mxu0 }
 0x4f3 PF: > { %s2032_s30 = sadd.s32 4294967295, %s1568_s29   ;;  %s1582_s19 = smov [#allocation11]  }
 0x4f4   : > { %p1964_p5 = scmp.eq.s32.totalorder %s2032_s30, 1  ;;  %s904_s20 = sshll.u32 %s1582_s19, 4  ;;  %s905_s20 = int_to_ptr.vmem [resolvable:$true] %s904_s20 }
 0x4f5   : > { %s1480_s13 = scalar_lea.vmem %s905_s20, 128  ;;  %p1487_p0 = scmp.lt.s32.totalorder %s905_s20, %s905_s20 }
 0x4f6   : > { %p1481_p9 = scmp.ne.s32.totalorder %s905_s20, %s1480_s13  ;;  %p1488_p2 = scmp.lt.s32.totalorder %s1480_s13, %s1480_s13 }
 0x4f8   : > { %p1482_p12 = pnand %p1481_p9, %p1964_p5  ;;  %p1489_p6 = por %p1488_p2, %p1487_p0 }
 0x4fa   : > { %p1483_p13 = pneg %p1482_p12 }
 0x4fc   : > { %p1490_p10 = pnand %p1489_p6, %p1483_p13 }
 0x4fe   : > { %1493 = shalt.err (!%p1490_p10)
}
 0x4ff   : > { %s2034_s17 = sld [smem:[#allocation16_spill]] }
 0x505   : > { %s1494_s8 = scalar_lea.hbm %s2034_s17, 128 }
 0x506   : > { %p1495_p1 = scmp.ne.s32.totalorder %s2034_s17, %s1494_s8  ;;  %p1500_p11 = scmp.lt.u32.totalorder %s1494_s8, %s2034_s17 }
 0x508   : > { %p1496_p3 = pnand %p1495_p1, %p1964_p5 }
 0x50a   : > { %p1497_p8 = pneg %p1496_p3 }
 0x50c   : > { %p1502_p7 = pnand %p1500_p11, %p1497_p8 }
 0x50e   : > { %1505 = shalt.err (!%p1502_p7)
}
 0x50f   : > { %1252 = dma.vmem_to_hbm [thread:$0]  (%p1964_p5), %s905_s20, 128, %s2034_s17, [#allocation5]  }
 0x510   : > { %1543 = dma.done.wait (%p1964_p5), [#allocation5], 128  }
 0x511   : > { %1545 = vsyncadd (%p1964_p5), [#allocation5], 4294967168 }
 0x512 PF: > { %s23_s29 = sadd.s32 1, %s1568_s29   ;;  %s2035_s24 = smov %s1552_s25 }
 0x513   : > { %p20_p4 = scmp.ge.s32.totalorder %s23_s29, 4   ;;  %s2036_s25 = smov %s1556_s26 }
 0x514   : > { %s2037_s26 = smov %s1778_s11  ;;  %s2038_s27 = smov %s1564_s28 }
 0x515   : > { %s2039_s28 = smov %s2041_s23  ;;  %22 = sbr.rel (!%p20_p4) target bundleno = 9 (0x9), region = 109 }
 0x51c   :  { %917 = vsyncpa [#allocation4], 1 }
 0x51d   :  { %919 = vsyncpa [#allocation4 + $0x1], 1 }
 0x51e   :  { %920 = vsyncpa [#allocation7], 1 }
 0x51f   :  { %921 = vsyncpa [#allocation10], 1 }
 0x520   :  { %922 = vsyncpa [#allocation5], 1 }
 0x521   :  { %924 = vsyncpa [#allocation5 + $0x1], 1 }

</bundles_post_ra>
